<compile_context>
chip_gen: v5e
topology: v5e:2x2
jax: 0.10.0
libtpu: 0.0.40
codegen_flags: <defaults>
</compile_context>

<pallas_src>
import math

import jax
import jax.numpy as jnp
from jax.experimental import pallas as pl
from jax.experimental.pallas import tpu as pltpu


# ----------------------------------------------------------------------------
# Buffer construction (mirrors PositionalEncoding.__init__, bug-faithful)
# ----------------------------------------------------------------------------
def make_pe_buffer(d_model: int, max_len: int = 5000) -> jnp.ndarray:
    position = jnp.arange(max_len, dtype=jnp.float32)[:, None]              # (max_len, 1)
    div_term = jnp.exp(jnp.arange(0, d_model, 2, dtype=jnp.float32)
                       * (-math.log(1000.0) / d_model))                     # (d_model//2,)
    pe = jnp.zeros((max_len, 1, d_model), dtype=jnp.float32)
    # Reference writes into pe[:0, ...] -> empty slice -> pe stays all zeros.
    sin_vals = jnp.sin(position * div_term)
    cos_vals = jnp.cos(position * div_term)
    pe = pe.at[:0, 0, 0::2].set(sin_vals[:0])
    pe = pe.at[:0, 0, 1::2].set(cos_vals[:0])
    return pe


# ----------------------------------------------------------------------------
# Kernels: pure elementwise on lane-dense 2D tiles
# ----------------------------------------------------------------------------
def _add_pe_dropout_kernel(x_ref, pe_ref, m_ref, o_ref):
    # mask already holds 0.0 or 1/(1-p): single fused multiply, no select.
    o_ref[...] = ((x_ref[...] + pe_ref[...]) * m_ref[...]).astype(o_ref.dtype)


def _add_pe_kernel(x_ref, pe_ref, o_ref):
    o_ref[...] = (x_ref[...] + pe_ref[...]).astype(o_ref.dtype)


# ----------------------------------------------------------------------------
# Wrapper
# ----------------------------------------------------------------------------
def positional_encoding_forward(x: jnp.ndarray,
                                pe: jnp.ndarray,
                                *,
                                dropout_key=None,
                                p: float = 0.1,
                                training: bool = True) -> jnp.ndarray:
    """x: (seq_len, batch, d_model); pe: (max_len, 1, d_model)."""
    S, B, D = x.shape
    dtype = x.dtype

    # Window + broadcast the buffer over batch on the host (cheap XLA broadcast;
    # for this bug-faithful module the buffer is all zeros anyway).
    pe_b = jnp.broadcast_to(pe[:S].astype(dtype), (S, B, D))

    use_dropout = bool(training) and p > 0.0
    if use_dropout and p >= 1.0:
        return jnp.zeros_like(x)
    if use_dropout:
        if dropout_key is None:
            dropout_key = jax.random.PRNGKey(0)
        keep = jax.random.bernoulli(dropout_key, 1.0 - p, (S, B, D))
        mask = keep.astype(dtype) * jnp.asarray(1.0 / (1.0 - p), dtype)

    # ---- lane-dense 2D refold ------------------------------------------------
    # x, pe_b (and mask) are element-for-element aligned, so ANY identical
    # reshape preserves the elementwise op.  Pick the widest lane dim (multiple
    # of 128) that divides the element count and leaves >= 8 rows; otherwise
    # fall back to the natural (S, B*D) fold (lane dim == full array dim, so the
    # (8,128) BlockSpec rule is still satisfied).
    N = S * B * D
    W = next((w for w in (2048, 1024, 512, 256, 128)
              if N % w == 0 and (N // w) >= 8), None)
    if W is None:
        W = B * D
    R = N // W

    x2 = x.reshape(R, W)
    pe2 = pe_b.reshape(R, W)

    # ---- tile rows so each per-tile buffer is ~2 MiB -------------------------
    # (3 inputs + 1 output, each double-buffered -> ~16 MiB, safe for v7x's
    #  32 MiB scoped-VMEM default.)
    row_bytes = W * jnp.dtype(dtype).itemsize
    ts = max(1, (2 * 1024 * 1024) // row_bytes)
    if ts >= R:
        ts = R                       # full extent: always legal
    else:
        ts = max(8, (ts // 8) * 8)   # sublane-aligned tile

    grid = (pl.cdiv(R, ts),)
    spec = pl.BlockSpec((ts, W), lambda i: (i, 0))
    cparams = pltpu.CompilerParams(dimension_semantics=("parallel",))
    out_shape = jax.ShapeDtypeStruct((R, W), dtype)

    if use_dropout:
        m2 = mask.reshape(R, W)
        out2 = pl.pallas_call(
            _add_pe_dropout_kernel,
            out_shape=out_shape,
            grid=grid,
            in_specs=[spec, spec, spec],
            out_specs=spec,
            compiler_params=cparams,
        )(x2, pe2, m2)
    else:
        out2 = pl.pallas_call(
            _add_pe_kernel,
            out_shape=out_shape,
            grid=grid,
            in_specs=[spec, spec],
            out_specs=spec,
            compiler_params=cparams,
        )(x2, pe2)

    return out2.reshape(S, B, D)


# ----------------------------------------------------------------------------
# Demo
# ----------------------------------------------------------------------------
if __name__ == "__main__":
    d_model = 32
    seq_len = 8
    batch = 2
    max_len = 5000
    p = 0.1

    root = jax.random.PRNGKey(0)
    k_x, k_drop = jax.random.split(root)
    x = jax.random.normal(k_x, (seq_len, batch, d_model), dtype=jnp.float32)
    pe = make_pe_buffer(d_model, max_len)

    # Training path (with dropout).
    out = positional_encoding_forward(x, pe, dropout_key=k_drop, p=p, training=True)
    out = jax.block_until_ready(out)
    assert out.shape == (seq_len, batch, d_model), out.shape
    assert out.dtype == jnp.float32

    # With the (bug-faithful) all-zero pe buffer and inverted dropout, every
    # output element is either 0 or x * 1/(1-p).
    scale = jnp.float32(1.0 / (1.0 - p))
    ok = jnp.all(jnp.isclose(out, 0.0) | jnp.isclose(out, x * scale, atol=1e-6, rtol=1e-6))
    assert bool(ok), "dropout output not consistent with inverted-dropout of (x + pe)"

    # Eval path: dropout disabled -> out == x + 0.
    out_eval = jax.block_until_ready(
        positional_encoding_forward(x, pe, p=p, training=False))
    assert bool(jnp.allclose(out_eval, x, atol=1e-6)), "eval path mismatch"

    print("KERNEL_OK")
</pallas_src>

<mosaic_0001>
module attributes {stable_mosaic.version = 11 : i64} {
  func.func @_add_pe_dropout_kernel(%arg0: i32, %arg1: memref<8x64xf32, #tpu.memory_space<vmem>>, %arg2: memref<8x64xf32, #tpu.memory_space<vmem>>, %arg3: memref<8x64xf32, #tpu.memory_space<vmem>>, %arg4: memref<8x64xf32, #tpu.memory_space<vmem>>) attributes {dimension_semantics = [#tpu.dimension_semantics<parallel>], iteration_bounds = array<i64: 1>, scalar_prefetch = 0 : i64, scratch_operands = 0 : i64, tpu.core_type = #tpu.core_type<tc>, window_params = [{transform_indices = @transform_0, window_bounds = array<i64: 8, 64>}, {transform_indices = @transform_1, window_bounds = array<i64: 8, 64>}, {transform_indices = @transform_2, window_bounds = array<i64: 8, 64>}, {transform_indices = @transform_3, window_bounds = array<i64: 8, 64>}]} {
    %c0 = arith.constant 0 : index
    %c0_0 = arith.constant 0 : index
    %0 = vector.load %arg1[%c0, %c0_0] : memref<8x64xf32, #tpu.memory_space<vmem>>, vector<8x64xf32>
    %c0_1 = arith.constant 0 : index
    %c0_2 = arith.constant 0 : index
    %1 = vector.load %arg2[%c0_1, %c0_2] : memref<8x64xf32, #tpu.memory_space<vmem>>, vector<8x64xf32>
    %2 = arith.addf %0, %1 : vector<8x64xf32>
    %c0_3 = arith.constant 0 : index
    %c0_4 = arith.constant 0 : index
    %3 = vector.load %arg3[%c0_3, %c0_4] : memref<8x64xf32, #tpu.memory_space<vmem>>, vector<8x64xf32>
    %4 = arith.mulf %2, %3 : vector<8x64xf32>
    %c0_5 = arith.constant 0 : index
    %c0_6 = arith.constant 0 : index
    %5 = vector.load %arg4[%c0_5, %c0_6] : memref<8x64xf32, #tpu.memory_space<vmem>>, vector<8x64xf32>
    tpu.vector_store %arg4[%c0_5, %c0_6], %4 {strides = array<i32>} : memref<8x64xf32, #tpu.memory_space<vmem>>, vector<8x64xf32>,
    return
  }
  func.func @transform_0(%arg0: i32) -> (i32, i32) {
    %c0_i32 = arith.constant 0 : i32
    %c0_i32_0 = arith.constant 0 : i32
    return %arg0, %c0_i32 : i32, i32
  }
  func.func @transform_1(%arg0: i32) -> (i32, i32) {
    %c0_i32 = arith.constant 0 : i32
    %c0_i32_0 = arith.constant 0 : i32
    return %arg0, %c0_i32 : i32, i32
  }
  func.func @transform_2(%arg0: i32) -> (i32, i32) {
    %c0_i32 = arith.constant 0 : i32
    %c0_i32_0 = arith.constant 0 : i32
    return %arg0, %c0_i32 : i32, i32
  }
  func.func @transform_3(%arg0: i32) -> (i32, i32) {
    %c0_i32 = arith.constant 0 : i32
    %c0_i32_0 = arith.constant 0 : i32
    return %arg0, %c0_i32 : i32, i32
  }
}

</mosaic_0001>

<bundles_post_ra>
// kernel: tpu_custom_call.1
= control target key start
LH: loop header
LB: loop body
LE: loop exit
PB: predicated region body
PF: predicated region fallthrough
CT: control target
= control target key end

     0   :  { %8 = vsyncpa [#allocation3], 0  ;;  %s223_s0 = inlined_call_operand.hbm [shape: f32[8,64], index: 0, kind: input, shape index: {}]   ;;  %s224_s1 = inlined_call_operand.hbm [shape: f32[8,64], index: 1, kind: input, shape index: {}]   ;;  %s225_s2 = inlined_call_operand.hbm [shape: f32[8,64], index: 2, kind: input, shape index: {}]   ;;  %s226_s3 = inlined_call_operand.hbm [shape: f32[8,64], index: 3, kind: output, shape index: {}]  }
   0x1   :  { %9 = vsyncpa [#allocation6], 0  ;;  %s27_s14 = sshll.u32 %s224_s1, 4  ;;  %s28_s14 = int_to_ptr.hbm [resolvable:$true] %s27_s14 }
   0x2   :  { %10 = vsyncpa [#allocation4], 0  ;;  %s187_s15 = smov [#allocation5]   ;;  %s16_s19 = sshll.u32 %s223_s0, 4  ;;  %s17_s19 = int_to_ptr.hbm [resolvable:$true] %s16_s19 }
   0x3   :  { %s29_s16 = sshll.u32 %s187_s15, 4  ;;  %s188_s20 = smov [#allocation2]   ;;  %s30_s16 = int_to_ptr.vmem [resolvable:$true] %s29_s16 }
   0x4   :  { %32 = dma.hbm_to_vmem [thread:$0]  %s28_s14, 128, %s30_s16, [#allocation6]  }
   0x5   :  { %s18_s21 = sshll.u32 %s188_s20, 4  ;;  %s38_s24 = sshll.u32 %s225_s2, 4  ;;  %s19_s21 = int_to_ptr.vmem [resolvable:$true] %s18_s21  ;;  %s39_s24 = int_to_ptr.hbm [resolvable:$true] %s38_s24 }
   0x6   :  { %21 = dma.hbm_to_vmem [thread:$0]  %s17_s19, 128, %s19_s21, [#allocation3]  }
   0x7   :  { %s189_s1 = smov [#allocation7]  }
   0x8   :  { %s40_s25 = sshll.u32 %s189_s1, 4  ;;  %s41_s25 = int_to_ptr.vmem [resolvable:$true] %s40_s25 }
   0x9   :  { %43 = dma.hbm_to_vmem [thread:$0]  %s39_s24, 128, %s41_s25, [#allocation6]  }
   0xa   :  { %181 = dma.done.wait [#allocation3], 128  }
   0xb   :  { %182 = vsyncadd [#allocation3], 4294967168 }
   0xc   :  { %183 = dma.done.wait [#allocation6], 256  }
   0xd   :  { %184 = vsyncadd [#allocation6], 4294967040  ;;  %v56_v0 = vld [vmem:[#allocation2] sm:$0xff]  ;;  %v57_v1 = vld [vmem:[#allocation5] sm:$0xff]  ;;  %s190_s0 = smov [#allocation8]   ;;  %s70_s2 = sshll.u32 %s226_s3, 4  ;;  %s71_s2 = int_to_ptr.hbm [resolvable:$true] %s70_s2 }
   0xe   :  { %v59_v2 = vld [vmem:[#allocation7] sm:$0xff]  ;;  %s68_s26 = sshll.u32 %s190_s0, 4  ;;  %v58_v3 = vadd.f32 %v57_v1, %v56_v0  ;;  %vm61_vm0 = vcmask 523264   ;;  %s69_s26 = int_to_ptr.vmem [resolvable:$true] %s68_s26 }
  0x10   :  { %v60_v4 = vmul.f32 %v59_v2, %v58_v3 }
  0x12   :  { %62 = vst.msk [vmem:[#allocation8] sm:$0xff] %vm61_vm0, %v60_v4 }
  0x13   :  { %73 = dma.vmem_to_hbm [thread:$0]  %s69_s26, 128, %s71_s2, [#allocation4]  }
  0x14   :  { %185 = dma.done.wait [#allocation4], 128  }
  0x15   :  { %186 = vsyncadd [#allocation4], 4294967168 }
  0x16   :  { %78 = vsyncpa [#allocation3], 1 }
  0x17   :  { %79 = vsyncpa [#allocation6], 1 }
  0x18   :  { %80 = vsyncpa [#allocation4], 1 }

</bundles_post_ra>
